<compile_context>
chip_gen: v7x
topology: tpu7x:2x2x1
jax: 0.10.0
libtpu: 0.0.40
codegen_flags: <defaults>
</compile_context>

<pallas_src>
import functools
import math

import jax
import jax.numpy as jnp
from jax import lax
from jax.experimental import pallas as pl
from jax.experimental.pallas import tpu as pltpu


# ---------------------------------------------------------------------------
# Kernel
# ---------------------------------------------------------------------------

def _self_attention_kernel(x_ref, w_ref, b_ref, o_ref, *, seq, hidden, flat_attn):
    """One grid step processes a (Bt, S, H) slab of the batch.

    x_ref: (Bt, S, H)  input slab
    w_ref: (3, H, H)   pre-transposed [Wq.T / sqrt(H), Wk.T, Wv.T]
    b_ref: (3, 1, H)   [bq / sqrt(H), bk, bv]
    o_ref: (Bt, S, H)  attention output
    """
    bt = x_ref.shape[0]
    n = bt * seq
    x = x_ref[...]

    # MXU operand dtype: bf16 inputs stay bf16 (native MXU rate, halves vreg/VMEM
    # pressure); all accumulation + softmax math stays f32 (required on v5e).
    mxu_dtype = jnp.bfloat16 if x.dtype == jnp.bfloat16 else jnp.float32

    # Project on flattened (Bt*S, H) rows so the MXU M dimension is as large as
    # possible.  The leading-dim merge is a pure-layout no-op when S % 8 == 0
    # (sublane aligned).
    # TODO(synk): pad S to a multiple of 8 in the wrapper if S % 8 != 0 ever
    # matters — the reshape then costs a VMEM relayout copy (correct, just slower).
    x2 = x.reshape(n, hidden)

    def project(i):
        # Three separate Q/K/V matmuls (same MXU pass count as a fused (H, 3H)
        # matmul) so every result starts at lane offset 0 — no lane-offset
        # slicing / masked stores when H % 128 != 0.
        y = jnp.dot(x2, w_ref[i], preferred_element_type=jnp.float32) + b_ref[i]
        return y.astype(mxu_dtype)                                   # (n, H)

    q = project(0)   # 1/sqrt(H) already folded into the Q weight/bias
    k = project(1)
    v = project(2)

    if flat_attn:
        # Small-S path: one well-shaped (n, H) x (H, n) MXU matmul with a
        # block-diagonal mask instead of Bt tiny (S, H) x (H, S) matmuls that
        # occupy only S of the 128/256 MXU rows.
        scores = lax.dot_general(q, k, (((1,), (1,)), ((), ())),
                                 preferred_element_type=jnp.float32)  # (n, n)
        if bt > 1:
            row = lax.broadcasted_iota(jnp.int32, (n, n), 0) // seq
            col = lax.broadcasted_iota(jnp.int32, (n, n), 1) // seq
            scores = jnp.where(row == col, scores, jnp.float32(-1e30))
        m = jnp.max(scores, axis=-1, keepdims=True)
        e = jnp.exp(scores - m)                  # masked entries underflow to 0
        denom = jnp.sum(e, axis=-1, keepdims=True)
        probs = e * pl.reciprocal(denom, approx=True)
        # probs is zero outside the block diagonal, so one big (n, n) x (n, H)
        # matmul equals the batched block-diagonal PV product.
        out = jnp.dot(probs.astype(mxu_dtype), v,
                      preferred_element_type=jnp.float32)             # (n, H)
        o_ref[...] = out.reshape(bt, seq, hidden).astype(o_ref.dtype)
    else:
        qb = q.reshape(bt, seq, hidden)
        kb = k.reshape(bt, seq, hidden)
        vb = v.reshape(bt, seq, hidden)
        # Contract last dims directly (no materialized K transpose).
        scores = jnp.einsum("bqd,bkd->bqk", qb, kb,
                            preferred_element_type=jnp.float32)       # (Bt, S, S)
        m = jnp.max(scores, axis=-1, keepdims=True)
        e = jnp.exp(scores - m)
        denom = jnp.sum(e, axis=-1, keepdims=True)
        probs = e * pl.reciprocal(denom, approx=True)
        out = jnp.einsum("bqk,bkd->bqd", probs.astype(mxu_dtype), vb,
                         preferred_element_type=jnp.float32)          # (Bt, S, H)
        o_ref[...] = out.astype(o_ref.dtype)


# ---------------------------------------------------------------------------
# Wrapper helpers
# ---------------------------------------------------------------------------

def prepare_qkv_params(wq, bq, wk, bk, wv, bv, dtype=None):
    """One-time weight prep; hoist out of the per-call path when weights are reused.

    Returns (wqkv, bqkv): stacked pre-transposed weights (3, H, H) and biases
    (3, 1, H) with 1/sqrt(H) folded into the Q slice.
    """
    H = wq.shape[0]
    if dtype is None:
        dtype = wq.dtype
    inv = 1.0 / math.sqrt(H)
    wqkv = jnp.stack([wq.T * inv, wk.T, wv.T], axis=0).astype(dtype)        # (3, H, H)
    bqkv = jnp.stack([bq * inv, bk, bv], axis=0).reshape(3, 1, H).astype(dtype)
    return wqkv, bqkv


def _vmem_capacity_bytes():
    """Per-TensorCore VMEM capacity (generation aware), with a conservative fallback."""
    try:
        info = pltpu.get_tpu_info()
        for name in ("vmem_capacity_bytes", "vmem_bytes", "vmem_size_bytes"):
            val = getattr(info, name, None)
            if val:
                return int(val)
    except Exception:
        pass
    return 64 << 20   # conservative: v7x per-TC VMEM (v5e/v6e have 128 MiB)


def _use_flat_attention(batch_tile, seq):
    # Flattened block-diagonal attention pays off when S is tiny (MXU row-tile
    # waste) and the flattened (n, n) score matrix stays small.
    return seq % 8 == 0 and seq <= 32 and batch_tile * seq <= 512


def _vmem_estimate_bytes(batch_tile, seq, hidden, itemsize):
    """Per-grid-step VMEM estimate incl. double buffering and in-kernel f32 temps."""
    n = batch_tile * seq
    slab = n * hidden * itemsize
    est = 2 * 2 * slab                                     # 2x-buffered input + output slabs
    est += 2 * 3 * (hidden * hidden + hidden) * itemsize   # weights + bias (worst case 2x)
    est += 4 * n * hidden * 4                              # q, k, v, out f32 temps
    if _use_flat_attention(batch_tile, seq):
        est += 3 * n * n * 4                               # scores / exp / probs (n x n)
    else:
        est += 3 * batch_tile * seq * seq * 4              # scores / exp / probs (Bt, S, S)
    est += slab                                            # slack for relayout temps
    return est


def _choose_batch_tile(B, seq, hidden, itemsize, budget):
    divisors = [d for d in range(1, B + 1) if B % d == 0]
    feasible = [d for d in divisors
                if _vmem_estimate_bytes(d, seq, hidden, itemsize) <= budget]
    if not feasible:
        return 1

    seq_qualifies_flat = _use_flat_attention(1, seq)

    def key(d):
        steps = B // d
        rows = d * seq
        return (
            min(steps, 4),                                        # enough steps to hide DMA
            1 if (_use_flat_attention(d, seq) or not seq_qualifies_flat) else 0,
            1 if rows >= 128 else 0,                              # >= one MXU row tile
            min(steps, 8),                                        # ~4 steps per TC on v7x
            1 if (steps == 1 or steps % 2 == 0) else 0,           # even grid for 2 TCs
            2 if rows % 256 == 0 else (1 if rows % 128 == 0 else 0),  # MXU M alignment
            -steps,                                               # then prefer bigger slabs
        )

    return max(feasible, key=key)


# ---------------------------------------------------------------------------
# Public entry point
# ---------------------------------------------------------------------------

def self_attention(particles, wq=None, bq=None, wk=None, bk=None, wv=None, bv=None,
                   *, prepared_params=None, batch_tile=None):
    """particles: (B, S, H); weights (H, H) PyTorch-layout; biases (H,).

    Pass prepared_params=prepare_qkv_params(...) to skip per-call weight prep.
    """
    B, S, H = particles.shape
    dtype = particles.dtype
    itemsize = jnp.dtype(dtype).itemsize

    if prepared_params is None:
        wqkv, bqkv = prepare_qkv_params(wq, bq, wk, bk, wv, bv, dtype)
    else:
        wqkv, bqkv = prepared_params

    cap = _vmem_capacity_bytes()
    budget = int(0.55 * cap)      # leave headroom for compiler scratch / spill paths
    if batch_tile is None:
        batch_tile = _choose_batch_tile(B, S, H, itemsize, budget)
    else:
        assert B % batch_tile == 0, "batch_tile must divide the batch size"

    flat_attn = _use_flat_attention(batch_tile, S)
    est = _vmem_estimate_bytes(batch_tile, S, H, itemsize)
    vmem_limit = int(min(0.9 * cap, max(32 << 20, int(1.5 * est))))

    kernel = functools.partial(_self_attention_kernel,
                               seq=S, hidden=H, flat_attn=flat_attn)

    def build(single_buffer_weights):
        if single_buffer_weights:
            # Constant index_map => double-buffering the resident weight is pure
            # VMEM waste (6 MiB at H=512 f32); request a single buffer.
            w_spec = pl.BlockSpec((3, H, H), lambda b: (0, 0, 0),
                                  pipeline_mode=pl.Buffered(1))
            b_spec = pl.BlockSpec((3, 1, H), lambda b: (0, 0, 0),
                                  pipeline_mode=pl.Buffered(1))
        else:
            w_spec = pl.BlockSpec((3, H, H), lambda b: (0, 0, 0))
            b_spec = pl.BlockSpec((3, 1, H), lambda b: (0, 0, 0))
        return pl.pallas_call(
            kernel,
            out_shape=jax.ShapeDtypeStruct((B, S, H), dtype),
            grid_spec=pltpu.PrefetchScalarGridSpec(
                num_scalar_prefetch=0,
                grid=(B // batch_tile,),
                in_specs=[
                    pl.BlockSpec((batch_tile, S, H), lambda b: (b, 0, 0)),  # particles slab
                    w_spec,                                                 # stacked weights
                    b_spec,                                                 # stacked biases
                ],
                out_specs=pl.BlockSpec((batch_tile, S, H), lambda b: (b, 0, 0)),
            ),
            compiler_params=pltpu.CompilerParams(
                dimension_semantics=("parallel",),
                vmem_limit_bytes=vmem_limit,
            ),
        )

    # Only try single-buffered weights when the reclaimed VMEM matters; fall back
    # to default double buffering if this JAX version rejects pl.Buffered(1).
    weight_bytes = 3 * (H * H + H) * itemsize
    attempts = (True, False) if weight_bytes >= (1 << 20) else (False,)
    last_err = None
    for single_buffer in attempts:
        try:
            return build(single_buffer)(particles, wqkv, bqkv)
        except Exception as err:  # retry with the known-good configuration
            last_err = err
    raise last_err


# ---------------------------------------------------------------------------
# Reference + test
# ---------------------------------------------------------------------------

def self_attention_ref(particles, wq, bq, wk, bk, wv, bv):
    """Pure-JAX reference matching the PyTorch forward."""
    H = particles.shape[-1]
    q = particles @ wq.T + bq
    k = particles @ wk.T + bk
    v = particles @ wv.T + bv
    scores = jnp.einsum("bsh,bth->bst", q, k) / math.sqrt(H)
    probs = jax.nn.softmax(scores, axis=-1)
    return jnp.einsum("bst,bth->bsh", probs, v)


if __name__ == "__main__":
    # Small shapes consistent with the module: batch=2, seq (num particles)=8, hidden=32.
    B, S, H = 2, 8, 32
    key = jax.random.PRNGKey(0)
    kx, kwq, kbq, kwk, kbk, kwv, kbv = jax.random.split(key, 7)

    particles = jax.random.normal(kx, (B, S, H), dtype=jnp.float32)

    # Deterministic parameter init mirroring nn.Linear's uniform(-1/sqrt(H), 1/sqrt(H)).
    bound = 1.0 / math.sqrt(H)
    init = lambda k_, shape: jax.random.uniform(k_, shape, jnp.float32, -bound, bound)
    wq, bq = init(kwq, (H, H)), init(kbq, (H,))
    wk, bk = init(kwk, (H, H)), init(kbk, (H,))
    wv, bv = init(kwv, (H, H)), init(kbv, (H,))

    out = self_attention(particles, wq, bq, wk, bk, wv, bv)
    out = jax.block_until_ready(out)

    ref = self_attention_ref(particles, wq, bq, wk, bk, wv, bv)
    assert out.shape == (B, S, H)
    # approx=True reciprocal (EUP vrcp) slightly loosens tolerance vs. the exact reference.
    assert jnp.allclose(out, ref, atol=5e-3, rtol=5e-3), "mismatch vs reference"

    print("KERNEL_OK")
</pallas_src>

<mosaic_0001>
module attributes {stable_mosaic.version = 11 : i64} {
  func.func @_self_attention_kernel(%arg0: i32, %arg1: memref<1x8x32xf32, #tpu.memory_space<vmem>>, %arg2: memref<3x32x32xf32, #tpu.memory_space<vmem>>, %arg3: memref<3x1x32xf32, #tpu.memory_space<vmem>>, %arg4: memref<1x8x32xf32, #tpu.memory_space<vmem>>) attributes {dimension_semantics = [#tpu.dimension_semantics<parallel>], iteration_bounds = array<i64: 2>, scalar_prefetch = 0 : i64, scratch_operands = 0 : i64, tpu.core_type = #tpu.core_type<tc>, window_params = [{transform_indices = @transform_0, window_bounds = array<i64: 1, 8, 32>}, {pipeline_mode = #tpu.pipeline_mode<synchronous>, transform_indices = @transform_1, window_bounds = array<i64: 3, 32, 32>}, {pipeline_mode = #tpu.pipeline_mode<synchronous>, transform_indices = @transform_2, window_bounds = array<i64: 3, 1, 32>}, {transform_indices = @transform_3, window_bounds = array<i64: 1, 8, 32>}]} {
    %c0 = arith.constant 0 : index
    %c0_0 = arith.constant 0 : index
    %c0_1 = arith.constant 0 : index
    %0 = vector.load %arg1[%c0, %c0_0, %c0_1] : memref<1x8x32xf32, #tpu.memory_space<vmem>>, vector<1x8x32xf32>
    %1 = vector.shape_cast %0 : vector<1x8x32xf32> to vector<8x32xf32>
    %c0_2 = arith.constant 0 : index
    %c0_3 = arith.constant 0 : index
    %c0_4 = arith.constant 0 : index
    %2 = vector.load %arg2[%c0_2, %c0_3, %c0_4] : memref<3x32x32xf32, #tpu.memory_space<vmem>>, vector<1x32x32xf32>
    %3 = vector.shape_cast %2 : vector<1x32x32xf32> to vector<32x32xf32>
    %cst = arith.constant dense<0.000000e+00> : vector<8x32xf32>
    %4 = tpu.matmul %1, %3, %cst {dimension_numbers = #tpu.dot_dimension_numbers<[1], [0], [0], [1], [0, 0, 1, 1], [], []>} : vector<8x32xf32>, vector<32x32xf32>, vector<8x32xf32> -> vector<8x32xf32>
    %c0_5 = arith.constant 0 : index
    %c0_6 = arith.constant 0 : index
    %c0_7 = arith.constant 0 : index
    %5 = vector.load %arg3[%c0_5, %c0_6, %c0_7] : memref<3x1x32xf32, #tpu.memory_space<vmem>>, vector<1x1x32xf32>
    %6 = vector.shape_cast %5 : vector<1x1x32xf32> to vector<1x32xf32>
    %7 = vector.broadcast %6 : vector<1x32xf32> to vector<8x32xf32>
    %8 = arith.addf %4, %7 : vector<8x32xf32>
    %c1 = arith.constant 1 : index
    %c0_8 = arith.constant 0 : index
    %c0_9 = arith.constant 0 : index
    %9 = vector.load %arg2[%c1, %c0_8, %c0_9] : memref<3x32x32xf32, #tpu.memory_space<vmem>>, vector<1x32x32xf32>
    %10 = vector.shape_cast %9 : vector<1x32x32xf32> to vector<32x32xf32>
    %cst_10 = arith.constant dense<0.000000e+00> : vector<8x32xf32>
    %11 = tpu.matmul %1, %10, %cst_10 {dimension_numbers = #tpu.dot_dimension_numbers<[1], [0], [0], [1], [0, 0, 1, 1], [], []>} : vector<8x32xf32>, vector<32x32xf32>, vector<8x32xf32> -> vector<8x32xf32>
    %c1_11 = arith.constant 1 : index
    %c0_12 = arith.constant 0 : index
    %c0_13 = arith.constant 0 : index
    %12 = vector.load %arg3[%c1_11, %c0_12, %c0_13] : memref<3x1x32xf32, #tpu.memory_space<vmem>>, vector<1x1x32xf32>
    %13 = vector.shape_cast %12 : vector<1x1x32xf32> to vector<1x32xf32>
    %14 = vector.broadcast %13 : vector<1x32xf32> to vector<8x32xf32>
    %15 = arith.addf %11, %14 : vector<8x32xf32>
    %c2 = arith.constant 2 : index
    %c0_14 = arith.constant 0 : index
    %c0_15 = arith.constant 0 : index
    %16 = vector.load %arg2[%c2, %c0_14, %c0_15] : memref<3x32x32xf32, #tpu.memory_space<vmem>>, vector<1x32x32xf32>
    %17 = vector.shape_cast %16 : vector<1x32x32xf32> to vector<32x32xf32>
    %cst_16 = arith.constant dense<0.000000e+00> : vector<8x32xf32>
    %18 = tpu.matmul %1, %17, %cst_16 {dimension_numbers = #tpu.dot_dimension_numbers<[1], [0], [0], [1], [0, 0, 1, 1], [], []>} : vector<8x32xf32>, vector<32x32xf32>, vector<8x32xf32> -> vector<8x32xf32>
    %c2_17 = arith.constant 2 : index
    %c0_18 = arith.constant 0 : index
    %c0_19 = arith.constant 0 : index
    %19 = vector.load %arg3[%c2_17, %c0_18, %c0_19] : memref<3x1x32xf32, #tpu.memory_space<vmem>>, vector<1x1x32xf32>
    %20 = vector.shape_cast %19 : vector<1x1x32xf32> to vector<1x32xf32>
    %21 = vector.broadcast %20 : vector<1x32xf32> to vector<8x32xf32>
    %22 = arith.addf %18, %21 : vector<8x32xf32>
    %cst_20 = arith.constant dense<0.000000e+00> : vector<8x8xf32>
    %23 = tpu.matmul %8, %15, %cst_20 {dimension_numbers = #tpu.dot_dimension_numbers<[1], [1], [0], [0], [0, 0, 1, 0], [], []>} : vector<8x32xf32>, vector<8x32xf32>, vector<8x8xf32> -> vector<8x8xf32>
    %cst_21 = arith.constant dense<0xFF800000> : vector<8xf32>
    %24 = vector.multi_reduction <maximumf>, %23, %cst_21 [1] : vector<8x8xf32> to vector<8xf32>
    %25 = vector.shape_cast %24 : vector<8xf32> to vector<8x1xf32>
    %26 = vector.broadcast %25 : vector<8x1xf32> to vector<8x8xf32>
    %27 = arith.subf %23, %26 : vector<8x8xf32>
    %28 = math.exp %27 : vector<8x8xf32>
    %cst_22 = arith.constant dense<0.000000e+00> : vector<8xf32>
    %29 = vector.multi_reduction <add>, %28, %cst_22 [1] : vector<8x8xf32> to vector<8xf32>
    %30 = vector.shape_cast %29 : vector<8xf32> to vector<8x1xf32>
    %31 = tpu.reciprocal %30 {approx = true} : vector<8x1xf32> -> vector<8x1xf32>
    %32 = vector.broadcast %31 : vector<8x1xf32> to vector<8x8xf32>
    %33 = arith.mulf %28, %32 : vector<8x8xf32>
    %cst_23 = arith.constant dense<0.000000e+00> : vector<8x32xf32>
    %34 = tpu.matmul %33, %22, %cst_23 {dimension_numbers = #tpu.dot_dimension_numbers<[1], [0], [0], [1], [0, 0, 1, 1], [], []>} : vector<8x8xf32>, vector<8x32xf32>, vector<8x32xf32> -> vector<8x32xf32>
    %35 = vector.shape_cast %34 : vector<8x32xf32> to vector<1x8x32xf32>
    %c0_24 = arith.constant 0 : index
    %c0_25 = arith.constant 0 : index
    %c0_26 = arith.constant 0 : index
    %36 = vector.load %arg4[%c0_24, %c0_25, %c0_26] : memref<1x8x32xf32, #tpu.memory_space<vmem>>, vector<1x8x32xf32>
    tpu.vector_store %arg4[%c0_24, %c0_25, %c0_26], %35 {strides = array<i32>} : memref<1x8x32xf32, #tpu.memory_space<vmem>>, vector<1x8x32xf32>,
    return
  }
  func.func @transform_0(%arg0: i32) -> (i32, i32, i32) {
    %c0_i32 = arith.constant 0 : i32
    %c0_i32_0 = arith.constant 0 : i32
    %c0_i32_1 = arith.constant 0 : i32
    return %arg0, %c0_i32, %c0_i32_0 : i32, i32, i32
  }
  func.func @transform_1(%arg0: i32) -> (i32, i32, i32) {
    %c0_i32 = arith.constant 0 : i32
    %c0_i32_0 = arith.constant 0 : i32
    %c0_i32_1 = arith.constant 0 : i32
    %c0_i32_2 = arith.constant 0 : i32
    return %c0_i32, %c0_i32_0, %c0_i32_1 : i32, i32, i32
  }
  func.func @transform_2(%arg0: i32) -> (i32, i32, i32) {
    %c0_i32 = arith.constant 0 : i32
    %c0_i32_0 = arith.constant 0 : i32
    %c0_i32_1 = arith.constant 0 : i32
    %c0_i32_2 = arith.constant 0 : i32
    return %c0_i32, %c0_i32_0, %c0_i32_1 : i32, i32, i32
  }
  func.func @transform_3(%arg0: i32) -> (i32, i32, i32) {
    %c0_i32 = arith.constant 0 : i32
    %c0_i32_0 = arith.constant 0 : i32
    %c0_i32_1 = arith.constant 0 : i32
    return %arg0, %c0_i32, %c0_i32_0 : i32, i32, i32
  }
}

</mosaic_0001>

<bundles_post_ra>
// kernel: tpu_custom_call.1
= control target key start
LH: loop header
LB: loop body
LE: loop exit
PB: predicated region body
PF: predicated region fallthrough
CT: control target
= control target key end

     0   :  { %8 = vsyncpa [#allocation3], 0  ;;  %s1261_s0 = inlined_call_operand.hbm [shape: f32[2,8,32], index: 0, kind: input, shape index: {}]   ;;  %s1262_s1 = inlined_call_operand.hbm [shape: f32[3,32,32], index: 1, kind: input, shape index: {}]   ;;  %s1263_s2 = inlined_call_operand.vmem [shape: f32[3,1,32], index: 2, kind: input, shape index: {}]   ;;  %s1264_s3 = inlined_call_operand.hbm [shape: f32[2,8,32], index: 3, kind: output, shape index: {}]  }
   0x1   :  { %10 = vsyncpa [#allocation3 + $0x1], 0 }
   0x2   :  { %11 = vsyncpa [#allocation6], 0 }
   0x3   :  { %12 = vsyncpa [#allocation4], 0 }
   0x4   :  { %14 = vsyncpa [#allocation4 + $0x1], 0  ;;  %s1038_s12 = smov 0   ;;  %s1040_s13 = smov 0  }
   0x5   :  { %s1042_s14 = smov 0   ;;  %s1044_s15 = smov 0  }
   0x6 LB: > { %s1059_s16 = sadd.s32 4294967295, %s1008_s15   ;;  %s709_s17 = sadd.s32 4294967294, %s1008_s15   ;;  %s1008_s15 = sphi %s1044_s15, %s1284_s15   ;;  %s1004_s14 = sphi %s1042_s14, %s1283_s14   ;;  %s1000_s13 = sphi %s1040_s13, %s1282_s13   ;;  %s996_s12 = sphi %s1038_s12, %s1281_s12  }
   0x7   : > { %p40_p0 = scmp.ne.s32.totalorder %s1000_s13, %s996_s12  ;;  %p1265_p1 = scmp.eq.s32.totalorder %s1059_s16, 0 }
   0x8   : > { %p112_p3 = scmp.eq.s32.totalorder %s709_s17, 1  ;;  %p710_p5 = scmp.ge.s32.totalorder %s1008_s15, 1 }
   0x9   : > { %p1068_p4 = por %p1265_p1, %p40_p0  ;;  %p119_p7 = scmp.lt.s32.totalorder %s1008_s15, 3 }
   0xa   : > { %p1073_p6 = por %p112_p3, %p40_p0  ;;  %s1010_s21 = smov [#allocation5]  }
   0xb   : > { %s1268_s18 = scalar_select %p1068_p4, 1, 0 }
   0xc   : > { %s1269_s19 = scalar_select %p1073_p6, 1, 0 }
   0xd   : > { %p1078_p8 = pnand %p710_p5, %p119_p7  ;;  %s131_s22 = sshll.u32 %s1010_s21, 4  ;;  %s1082_s22 = int_to_ptr.vmem [resolvable:$true] %s131_s22 }
   0xe   : > { %s1094_s24 = sadd.s32 1, %s1008_s15   ;;  %s27_s25 = sadd.s32 1, %s1004_s14 }
   0xf   : > { %s1270_s20 = scalar_select %p1078_p8, 1, 0 }
  0x10   : > { %p822_p9 = pneg %p1078_p8  ;;  %s24_s26 = ssub.s32 %s1008_s15, %s1094_s24 }
  0x11   : > { %s880_s29 = scalar_lea.hbm %s1262_s1, 1536 }
  0x12   : > { %p1089_p11 = pnand %p822_p9, %p1265_p1  ;;  %p881_p12 = scmp.ne.s32.totalorder %s1262_s1, %s880_s29 }
  0x13   : > { %p887_p5 = scmp.lt.u32.totalorder %s880_s29, %s1262_s1 }
  0x14   : > { %p882_p13 = pneg %p1089_p11 }
  0x16   : > { %p883_p0 = pnand %p882_p13, %p881_p12 }
  0x18   : > { %p884_p3 = pneg %p883_p0 }
  0x1a   : > { %p889_p7 = pnand %p887_p5, %p884_p3 }
  0x1c   : > { %892 = shalt.err (!%p889_p7)
}
  0x1d   : > { %s893_s7 = scalar_lea.vmem %s1082_s22, 1536  ;;  %p901_p2 = scmp.lt.s32.totalorder %s1082_s22, %s1082_s22 }
  0x1e   : > { %p894_p9 = scmp.ne.s32.totalorder %s1082_s22, %s893_s7  ;;  %p902_p6 = scmp.lt.s32.totalorder %s893_s7, %s893_s7 }
  0x20   : > { %p896_p10 = pnand %p894_p9, %p882_p13  ;;  %p903_p4 = por %p902_p6, %p901_p2 }
  0x22   : > { %p897_p1 = pneg %p896_p10 }
  0x24   : > { %p904_p8 = pnand %p903_p4, %p897_p1 }
  0x26   : > { %907 = shalt.err (!%p904_p8)
}
  0x27   : > { %s1011_s8 = smov 128   ;;  %s1012_s9 = smov 8  }
  0x28   : > { %825 = dma.hbm_to_vmem [thread:$0]  (!%p1089_p11), %s1262_s1, 1536, %s1082_s22, [#allocation6], %s1011_s8, %s1011_s8, %s1012_s9  }
  0x29   : > { %p25_p2 = scmp.eq.s32.totalorder %s24_s26, 0  ;;  %p34_p1 = scmp.ne.s32.totalorder %s1004_s14, %s1000_s13 }
  0x2a   : > { %p35_p4 = scmp.eq.s32.totalorder %s1008_s15, 0  ;;  %p835_p6 = scmp.lt.s32.totalorder %s1008_s15, 2 }
  0x2b   : > { %s1125_s17 = scalar_select %p25_p2, %s1004_s14, %s27_s25  }
  0x2c   : > { %p36_p8 = por %p35_p4, %p34_p1  ;;  %p1272_p10 = scmp.eq.s32.totalorder %s1059_s16, 1 }
  0x2d   : > { %s148_s27 = sand.u32 1, %s1004_s14   ;;  %s714_s28 = sshll.u32 %s1008_s15, 7 }
  0x2e   : > { %p1129_p12 = por %p1272_p10, %p34_p1  ;;  %s713_s29 = sshll.u32 %s148_s27, 3 }
  0x2f   : > { %s1138_s4 = scalar_lea.hbm %s1261_s0, %s714_s28  ;;  %s152_s22 = scalar_lea.vmem [#allocation2], %s713_s29 }
  0x30   : > { %s159_s25 = sshll.u32 %s152_s22, 4  ;;  %p1140_p11 = pnand %p835_p6, %p36_p8  ;;  %s1144_s25 = int_to_ptr.vmem [resolvable:$true] %s159_s25 }
  0x31   : > { %s149_s5 = scalar_lea.sflag [#allocation3], %s148_s27  ;;  %s908_s6 = scalar_lea.hbm %s1138_s4, 128 }
  0x32   : > { %p909_p13 = scmp.ne.s32.totalorder %s1138_s4, %s908_s6  ;;  %p910_p0 = pneg %p1140_p11 }
  0x33   : > { %s913_s9 = scalar_lea.hbm %s1261_s0, 256  ;;  %p914_p7 = scmp.lt.u32.totalorder %s1138_s4, %s1261_s0 }
  0x34   : > { %p911_p3 = pnand %p910_p0, %p909_p13  ;;  %p915_p9 = scmp.lt.u32.totalorder %s913_s9, %s908_s6 }
  0x35   : > { %p917_p1 = scmp.lt.u32.totalorder %s908_s6, %s1138_s4 }
  0x36   : > { %p912_p5 = pneg %p911_p3  ;;  %p916_p2 = por %p915_p9, %p914_p7 }
  0x38   : > { %p918_p4 = por %p917_p1, %p916_p2 }
  0x3a   : > { %p919_p6 = pnand %p918_p4, %p912_p5 }
  0x3c   : > { %922 = shalt.err (!%p919_p6)
}
  0x3d   : > { %s923_s27 = scalar_lea.vmem %s1144_s25, 128  ;;  %s1013_s28 = smov [#allocation2]  }
  0x3e   : > { %p924_p8 = scmp.ne.s32.totalorder %s1144_s25, %s923_s27  ;;  %s928_s29 = sshll.u32 %s1013_s28, 4  ;;  %s929_s29 = int_to_ptr.vmem [resolvable:$false] %s928_s29 }
  0x3f   : > { %s930_s23 = scalar_lea.vmem %s929_s29, 256  ;;  %p931_p3 = scmp.lt.s32.totalorder %s1144_s25, %s929_s29 }
  0x40   : > { %p926_p10 = pnand %p924_p8, %p910_p0  ;;  %p932_p7 = scmp.lt.s32.totalorder %s930_s23, %s923_s27 }
  0x42   : > { %p927_p13 = pneg %p926_p10  ;;  %p933_p9 = por %p932_p7, %p931_p3 }
  0x44   : > { %p934_p2 = pnand %p933_p9, %p927_p13 }
  0x46   : > { %937 = shalt.err (!%p934_p2)
}
  0x47   : > { %829 = dma.hbm_to_vmem [thread:$0]  (!%p1140_p11), %s1138_s4, 128, %s1144_s25, %s149_s5  }
  0x48   : > { %p1275_p5 = scmp.ne.s32.totalorder %s1270_s20, 0 }
  0x49   : > { %s1174_s30 = sand.u32 (!%p1275_p5), 1, %s1000_s13   ;;  %p1276_p0 = scmp.ne.s32.totalorder (!%p1275_p5), %s1268_s18, 0 }
  0x4a   : > { %168 = sbr.rel (%p1275_p5) target bundleno = 1064 (0x428), region = 32  ;;  %s716_s22 = sshll.u32 (!%p1275_p5), %s1174_s30, 3 }
  0x4b   : > { %s171_s6 = scalar_lea.sflag (!%p1275_p5), [#allocation3], %s1174_s30  ;;  %s174_s7 = scalar_lea.vmem (!%p1275_p5), [#allocation2], %s716_s22 }
  0x51   : > { %983 = dma.done.wait (%p1276_p0), %s171_s6, 128  }
  0x52   : > { %985 = vsyncadd (%p1276_p0), %s171_s6, 4294967168  ;;  %p1277_p11 = scmp.eq.s32.totalorder %s1059_s16, 0 }
  0x54   : > { %987 = dma.done.wait (%p1277_p11), [#allocation6], 1536   ;;  %p1278_p1 = pmov %p1277_p11 }
  0x55   : > { %v1014_v0 = vmov 0.0|0.0   ;;  %vm1015_vm0 = vmmov 0   ;;  %v1016_v1 = vmov 0.0   ;;  %v288_v2 = vld [vmem:[#allocation5 + $0x20] sm:$0xff]  ;;  %v289_v3 = vld [vmem:[#allocation5 + $0x28] sm:$0xff]  ;;  %v290_v7 = vld [vmem:[#allocation5 + $0x30] sm:$0xff] }
  0x56   : > { %989 = vsyncadd (%p1278_p1), [#allocation6], 4294965760  ;;  %802 = vmatprep.subr.bf16.mxu1 %v1014_v0  ;;  %796 = vmatprep.subr.bf16.mxu0 %v1014_v0  ;;  %v202_v4 = vld [vmem:[#allocation5] sm:$0xff]  ;;  %v803_v5 = vpack.c.bf16 %v289_v3, %v288_v2  ;;  %v203_v6 = vld [vmem:[#allocation5 + $0x8] sm:$0xff]  ;;  %vm213_vm1 = vcmask 261120   ;;  %vm529_vm2 = vcmask 64512  }
  0x57   : > { %772 = vmatprep.mubr.msk.f32.mxu1 %vm1015_vm0, %v1016_v1  ;;  %761 = vmatprep.mubr.msk.f32.mxu0 %vm1015_vm0, %v1016_v1  ;;  %v291_v8 = vld [vmem:[#allocation5 + $0x38] sm:$0xff]  ;;  %v797_v9 = vpack.c.bf16 %v203_v6, %v202_v4  ;;  %v204_v10 = vld [vmem:[#allocation5 + $0x10] sm:$0xff]  ;;  %v371_v23 = vld [vmem:[#allocation5 + $0x40] sm:$0xff]  ;;  %s731_s8 = sshll.u32 %s1059_s16, 7  ;;  %s200_s9 = scalar_lea.vmem [#allocation7], %s716_s22 }
  0x58   : > { %v205_v11 = vld [vmem:[#allocation5 + $0x18] sm:$0xff]  ;;  %804 = vmatpush3.bf16.msra.mxu1 %v803_v5  ;;  %v806_v12 = vpack.c.bf16 %v291_v8, %v290_v7  ;;  %v722_v15 = vld [vmem:[%s1263_s2 + $0x1] ss:$0 sm:$0xff]  ;;  %v719_v16 = vld [vmem:[%s1263_s2] ss:$0 sm:$0xff]  ;;  %s629_s10 = sshll.u32 %s200_s9, 4  ;;  %s1216_s28 = scalar_lea.hbm %s1264_s3, %s731_s8  ;;  %s1218_s10 = int_to_ptr.vmem [resolvable:$true] %s629_s10 }
  0x59   : > { %798 = vmatpush3.bf16.msra.mxu0 %v797_v9  ;;  %805 = vmatprep.subr.bf16.mxu1 %v1014_v0  ;;  %v800_v13 = vpack.c.bf16 %v205_v11, %v204_v10  ;;  %v201_v14 = vld [vmem:[%s174_s7] sm:$0xff]  ;;  %v372_v24 = vld [vmem:[#allocation5 + $0x48] sm:$0xff]  ;;  %s616_s29 = scalar_lea.sflag [#allocation4], %s1174_s30  ;;  %s938_s23 = scalar_lea.vmem %s1218_s10, 128 }
  0x5a   : > { %799 = vmatprep.subr.bf16.mxu0 %v1014_v0  ;;  %v373_v25 = vld [vmem:[#allocation5 + $0x50] sm:$0xff]  ;;  %v809_v26 = vpack.c.bf16 %v372_v24, %v371_v23  ;;  %v374_v27 = vld [vmem:[#allocation5 + $0x58] sm:$0xff]  ;;  %p939_p4 = scmp.ne.s32.totalorder %s1218_s10, %s938_s23  ;;  %s1017_s16 = smov [#allocation7]  }
  0x5b   : > { %v812_v28 = vpack.c.bf16 %v374_v27, %v373_v25  ;;  %v725_v38 = vld [vmem:[%s1263_s2 + $0x2] ss:$0 sm:$0xff]  ;;  %s942_s22 = sshll.u32 %s1017_s16, 4  ;;  %s943_s22 = int_to_ptr.vmem [resolvable:$false] %s942_s22 }
  0x5c   : > { %807 = vmatpush3.bf16.msra.mxu1 %v806_v12  ;;  %p940_p6 = pnand %p939_p4, %p1129_p12  ;;  %s944_s6 = scalar_lea.vmem %s943_s22, 256 }
  0x5d   : > { %801 = vmatpush3.bf16.msra.mxu0 %v800_v13  ;;  %786 = vmatprep.subr.mxu1 %v1016_v1  ;;  %p945_p10 = scmp.lt.s32.totalorder %s1218_s10, %s943_s22  ;;  %p946_p13 = scmp.lt.s32.totalorder %s944_s6, %s938_s23 }
  0x5e   : > { %808 = vmatprep.subr.bf16.mxu0 %v1014_v0  ;;  %p941_p8 = pneg %p940_p6 }
  0x5f   : > { %773 = vmatmul.mubr.msk.f32.vlgmr.msra.gmra.mrb[0].mxu1 %vm213_vm1, %v201_v14  ;;  %p947_p3 = por %p946_p13, %p945_p10 }
  0x60   : > { %762 = vmatmul.mubr.msk.f32.vlgmr.msra.gmra.mrb[0].mxu0 %vm213_vm1, %v201_v14  ;;  %788 = vmatprep.mubr.msk.f32.mxu1 %vm1015_vm0, %v1016_v1 }
  0x61   : > { %783 = vmatprep.mubr.msk.f32.mxu0 %vm1015_vm0, %v1016_v1  ;;  %810 = vmatpush3.bf16.msra.mxu0 %v809_v26  ;;  %p948_p7 = pnand %p947_p3, %p941_p8 }
  0x62   : > { %811 = vmatprep.subr.bf16.mxu0 %v1014_v0 }
  0x65   : > { %813 = vmatpush3.bf16.msra.mxu0 %v812_v28 }
  0x68   : > { %784 = vmatmul.mubr.msk.f32.vlgmr.msra.gmra.mrb[2].mxu0 %vm213_vm1, %v201_v14 }
 0x132   : > { %v366_v17 = vpop.f32.mrb[0].mxu1 }
 0x133   : > { %v367_v18 = vadd.f32 %v722_v15, %v366_v17  ;;  %v774_v19 = vpop.f32.mrb[1].mxu1  ;;  %v283_v20 = vpop.f32.mrb[0].mxu0 }
 0x134   : > { %v284_v21 = vadd.f32 %v719_v16, %v283_v20  ;;  %v763_v22 = vpop.f32.mrb[1].mxu0 }
 0x135   : > { %787 = vmatpush3.xpose.msk.msra.mxu1 %vm213_vm1, %v367_v18 }
 0x136   : > { %791 = vmatprep.subr.mxu1 %v1016_v1 }
 0x138   : > { %789 = vmatmul.mubr.msk.f32.vlgmr.msra.gmra.mrb[2].mxu1 %vm213_vm1, %v284_v21 }
 0x139   : > { %793 = vmatprep.mubr.msk.f32.mxu1 %vm1015_vm0, %v1016_v1 }
 0x13b   : > { %v449_v37 = vpop.f32.mrb[2].mxu0 }
 0x13c   : > { %v785_v39 = vpop.f32.mrb[3].mxu0  ;;  %v450_v40 = vadd.f32 %v725_v38, %v449_v37 }
 0x13e   : > { %792 = vmatpush3.msra.mxu1 %v450_v40 }
 0x20b   : > { %v525_v29 = vpop.f32.mrb[2].mxu1 }
 0x20c   : > { %v790_v30 = vpop.f32.mrb[3].mxu1  ;;  %v530_v31 = vsel %vm529_vm2, %v525_v29, -inf }
 0x20d   : > { %531 = vmax.xlane.f32.xlu0 %v530_v31 }
 0x29a   : > { %v532_v32 = vpop.xlane.xlu0 %531 }
 0x29b   : > { %v533_v33 = vsub.f32 %v525_v29, %v532_v32 }
 0x29d   : > { %v534_v34 = vmul.f32 1.442695, %v533_v33 }
 0x29f   : > { %876 = vpow2.f32 %v534_v34 }
 0x2a9   : > { %v877_v35 = vpop.eup %876 }
 0x2aa   : > { %v536_v36 = vsel %vm529_vm2, %v877_v35, 0.0 }
 0x2ab   : > { %537 = vadd.xlane.f32.xlu0 %v536_v36 }
 0x338   : > { %v538_v41 = vpop.xlane.xlu0 %537 }
 0x339   : > { %878 = vrcp.f32 %v538_v41 }
 0x343   : > { %v879_v42 = vpop.eup %878 }
 0x344   : > { %v540_v43 = vmul.f32 %v879_v42, %v877_v35 }
 0x346   : > { %794 = vmatmul.mubr.msk.f32.vlgmr.msra.gmra.mrb[4].mxu1 %vm529_vm2, %v540_v43 }
 0x419   : > { %v610_v44 = vpop.f32.mrb[4].mxu1 }
 0x41a   : > { %614 = vst.msk [vmem:[%s200_s9] sm:$0xff] %vm213_vm1, %v610_v44  ;;  %v795_v45 = vpop.f32.mrb[5].mxu1 }
 0x41b   : > { %951 = shalt.err (!%p948_p7)
}
 0x41c   : > { %s952_s30 = scalar_lea.hbm %s1216_s28, 128  ;;  %s956_s20 = scalar_lea.hbm %s1264_s3, 256 }
 0x41d   : > { %p953_p9 = scmp.ne.s32.totalorder %s1216_s28, %s952_s30  ;;  %p957_p0 = scmp.lt.u32.totalorder %s1216_s28, %s1264_s3 }
 0x41e   : > { %p958_p11 = scmp.lt.u32.totalorder %s956_s20, %s952_s30  ;;  %p960_p4 = scmp.lt.u32.totalorder %s952_s30, %s1216_s28 }
 0x41f   : > { %p954_p2 = pnand %p953_p9, %p1129_p12 }
 0x420   : > { %p959_p1 = por %p958_p11, %p957_p0 }
 0x421   : > { %p955_p5 = pneg %p954_p2 }
 0x422   : > { %p961_p6 = por %p960_p4, %p959_p1 }
 0x424   : > { %p962_p8 = pnand %p961_p6, %p955_p5 }
 0x426   : > { %965 = shalt.err (!%p962_p8)
}
 0x427   : > { %820 = dma.vmem_to_hbm [thread:$0]  (%p1129_p12), %s1218_s10, 128, %s1216_s28, %s616_s29  }
 0x428 PF: > { %s641_s26 = sand.u32 1, %s996_s12   ;;  %p1279_p10 = scmp.ne.s32.totalorder %s1269_s19, 0 }
 0x429   : > { %p1280_p13 = scmp.ge.s32.totalorder %s1008_s15, 2  ;;  %s642_s5 = scalar_lea.sflag [#allocation4], %s641_s26 }
 0x42b   : > { %p831_p3 = pnand %p1280_p13, %p1279_p10 }
 0x42d   : > { %991 = dma.done.wait (!%p831_p3), %s642_s5, 128  }
 0x42e   : > { %993 = vsyncadd (!%p831_p3), %s642_s5, 4294967168  ;;  %p17_p7 = scmp.ge.s32.totalorder %s1094_s24, 4   ;;  %s1281_s12 = smov %s1000_s13 }
 0x42f   : > { %s1282_s13 = smov %s1004_s14  ;;  %s1283_s14 = smov %s1125_s17 }
 0x430   : > { %s1284_s15 = smov %s1094_s24  ;;  %19 = sbr.rel (!%p17_p7) target bundleno = 6 (0x6), region = 85 }
 0x437   :  { %647 = vsyncpa [#allocation3], 1 }
 0x438   :  { %649 = vsyncpa [#allocation3 + $0x1], 1 }
 0x439   :  { %650 = vsyncpa [#allocation6], 1 }
 0x43a   :  { %651 = vsyncpa [#allocation4], 1 }
 0x43b   :  { %653 = vsyncpa [#allocation4 + $0x1], 1 }

</bundles_post_ra>
